<compile_context>
chip_gen: v5e
topology: v5e:2x2
jax: 0.10.0
libtpu: 0.0.40
codegen_flags: <defaults>
</compile_context>

<pallas_src>
import math

import jax
import jax.numpy as jnp
from jax import lax
from jax.experimental import pallas as pl
from jax.experimental.pallas import tpu as pltpu


def _round_up(x: int, m: int) -> int:
    return (x + m - 1) // m * m


def _vmem_capacity_bytes() -> int:
    try:
        return int(pltpu.get_tpu_info().vmem_capacity_bytes)
    except Exception:
        return 64 << 20  # conservative per-core fallback (v7x)


# --------------------------------------------------------------------------
# Path 1: table resident in VMEM, per-row gather with vector load/stores.
# --------------------------------------------------------------------------
def _vmem_gather_kernel(ids_ref, table_ref, out_ref):
    # ids_ref:   (N_pad,)      int32, SMEM (scalar-prefetched, full array)
    # table_ref: (V_pad, D_pad) table, VMEM-resident, single-buffered
    # out_ref:   (TM, D_pad)   gathered rows for this token tile
    tm = out_ref.shape[0]
    base = pl.program_id(0) * tm

    def body(j, carry):
        row = ids_ref[base + j]
        out_ref[pl.ds(j, 1), :] = table_ref[pl.ds(row, 1), :]
        return carry

    lax.fori_loop(0, tm, body, 0, unroll=False)


# --------------------------------------------------------------------------
# Path 2: table stays in HBM; double-buffered manual row DMAs into out tile.
# --------------------------------------------------------------------------
def _hbm_gather_kernel(ids_ref, table_hbm, out_ref, sem):
    # ids_ref:   (N_pad,) int32, SMEM
    # table_hbm: (V, D)   raw HBM ref (memory_space=pl.ANY)
    # out_ref:   (TM, D)  VMEM output tile (DMA target)
    # sem:       DMA semaphores, shape (2,)
    tm = out_ref.shape[0]
    base = pl.program_id(0) * tm

    def copy_desc(j, slot):
        row = ids_ref[base + j]
        return pltpu.make_async_copy(
            table_hbm.at[pl.ds(row, 1), :],
            out_ref.at[pl.ds(j, 1), :],
            sem.at[slot],
        )

    copy_desc(0, 0).start()

    def body(j, carry):
        slot = j % 2

        @pl.when(j + 1 < tm)
        def _():
            copy_desc(j + 1, 1 - slot).start()   # prefetch next row

        copy_desc(j, slot).wait()
        return carry

    lax.fori_loop(0, tm, body, 0, unroll=False)


# --------------------------------------------------------------------------
# Wrapper
# --------------------------------------------------------------------------
def embedding_forward(x, emb_table, *, tm=256, force_hbm_gather=False):
    """x: integer token ids (any leading shape); emb_table: (V, D).

    Returns emb_table[x] with shape x.shape + (D,). Out-of-range ids are
    clamped (PyTorch would raise).
    """
    lead_shape = x.shape
    N = int(math.prod(lead_shape))
    V, D = emb_table.shape
    itemsize = jnp.dtype(emb_table.dtype).itemsize

    ids = jnp.clip(x.reshape(N).astype(jnp.int32), 0, V - 1)

    capacity = _vmem_capacity_bytes()
    vmem_cap = capacity - max(capacity // 8, 8 << 20)  # ~112 MiB v5e/v6e, ~56 MiB v7x

    V_pad = _round_up(V, 8)
    D_pad = _round_up(D, 128)
    table_bytes = V_pad * D_pad * itemsize

    def fits(tm_):
        # single-buffered table + double-buffered output tile + Mosaic scratch
        return table_bytes + 2 * tm_ * D_pad * itemsize + (2 << 20) <= vmem_cap

    use_vmem_path = (not force_hbm_gather) and fits(8)

    if use_vmem_path:
        table = emb_table
        if (V_pad, D_pad) != (V, D):
            table = jnp.pad(table, ((0, V_pad - V), (0, D_pad - D)))

        tm_eff = min(_round_up(tm, 8), _round_up(N, 8))
        while tm_eff > 8 and not fits(tm_eff):
            tm_eff //= 2
        N_pad = _round_up(N, tm_eff)
        ids_pad = jnp.pad(ids, (0, N_pad - N)) if N_pad != N else ids

        vmem_limit = int(min(
            table_bytes + 2 * tm_eff * D_pad * itemsize + (6 << 20), vmem_cap))

        cost = pl.CostEstimate(
            flops=0, transcendentals=0,
            bytes_accessed=int(table_bytes            # table read once
                               + N_pad * D_pad * itemsize   # output
                               + 4 * N_pad))                # ids

        out = pl.pallas_call(
            _vmem_gather_kernel,
            out_shape=jax.ShapeDtypeStruct((N_pad, D_pad), emb_table.dtype),
            grid_spec=pltpu.PrefetchScalarGridSpec(
                num_scalar_prefetch=1,
                grid=(N_pad // tm_eff,),
                in_specs=[
                    # full table, VMEM-resident, single-buffered (fetched once)
                    pl.BlockSpec((V_pad, D_pad), lambda i, ids_smem: (0, 0),
                                 pipeline_mode=pl.Buffered(1)),
                ],
                out_specs=pl.BlockSpec((tm_eff, D_pad),
                                       lambda i, ids_smem: (i, 0)),
            ),
            compiler_params=pltpu.CompilerParams(
                dimension_semantics=("parallel",),
                vmem_limit_bytes=vmem_limit,
            ),
            cost_estimate=cost,
        )(ids_pad, table)
        return out[:N, :D].reshape(*lead_shape, D)

    # ---- HBM row-gather path (large tables / forced) -----------------------
    tm_eff = min(_round_up(tm, 8), _round_up(N, 8))
    N_pad = _round_up(N, tm_eff)
    ids_pad = jnp.pad(ids, (0, N_pad - N)) if N_pad != N else ids

    cost = pl.CostEstimate(
        flops=0, transcendentals=0,
        bytes_accessed=int(2 * N_pad * D * itemsize + 4 * N_pad))

    out = pl.pallas_call(
        _hbm_gather_kernel,
        out_shape=jax.ShapeDtypeStruct((N_pad, D), emb_table.dtype),
        grid_spec=pltpu.PrefetchScalarGridSpec(
            num_scalar_prefetch=1,
            grid=(N_pad // tm_eff,),
            in_specs=[
                pl.BlockSpec(memory_space=pl.ANY),   # table stays in HBM
            ],
            out_specs=pl.BlockSpec((tm_eff, D), lambda i, ids_smem: (i, 0)),
            scratch_shapes=[pltpu.SemaphoreType.DMA((2,))],
        ),
        compiler_params=pltpu.CompilerParams(
            dimension_semantics=("parallel",),
            vmem_limit_bytes=int(min(32 << 20, vmem_cap)),
        ),
        cost_estimate=cost,
    )(ids_pad, emb_table)
    return out[:N, :].reshape(*lead_shape, D)


def init_embedding_table(key, vocab_size, d_model, dtype=jnp.float32):
    # Matches torch.nn.init.trunc_normal_(mean=0, std=1, a=-3, b=3).
    return jax.random.truncated_normal(
        key, -3.0, 3.0, (vocab_size, d_model)
    ).astype(dtype)


if __name__ == "__main__":
    key = jax.random.PRNGKey(0)

    # Case 1: aligned shapes (vocab=256, d_model=128, 2x8 tokens) -> VMEM path.
    k_table, k_ids, key = jax.random.split(key, 3)
    vocab_size, d_model, batch, seq = 256, 128, 2, 8
    emb_table = init_embedding_table(k_table, vocab_size, d_model)
    x = jax.random.randint(k_ids, (batch, seq), 0, vocab_size, dtype=jnp.int32)
    out = jax.block_until_ready(embedding_forward(x, emb_table))
    ref = emb_table[x]
    assert out.shape == (batch, seq, d_model)
    assert out.dtype == emb_table.dtype
    assert jnp.allclose(out, ref), "case 1: Pallas embedding != reference"

    # Case 2: ragged shapes exercising padding (vocab=100, d_model=96, 3x5).
    k_table2, k_ids2, key = jax.random.split(key, 3)
    vocab_size2, d_model2, batch2, seq2 = 100, 96, 3, 5
    emb_table2 = init_embedding_table(k_table2, vocab_size2, d_model2)
    x2 = jax.random.randint(k_ids2, (batch2, seq2), 0, vocab_size2, dtype=jnp.int32)
    out2 = jax.block_until_ready(embedding_forward(x2, emb_table2))
    ref2 = emb_table2[x2]
    assert out2.shape == (batch2, seq2, d_model2)
    assert out2.dtype == emb_table2.dtype
    assert jnp.allclose(out2, ref2), "case 2: Pallas embedding != reference"

    # Case 3: force the HBM row-gather fallback (used for huge vocabularies,
    # e.g. on v7x where the table would not fit in 64 MiB of VMEM).
    k_table3, k_ids3 = jax.random.split(key)
    vocab_size3, d_model3, batch3, seq3 = 64, 128, 2, 8
    emb_table3 = init_embedding_table(k_table3, vocab_size3, d_model3)
    x3 = jax.random.randint(k_ids3, (batch3, seq3), 0, vocab_size3, dtype=jnp.int32)
    out3 = jax.block_until_ready(
        embedding_forward(x3, emb_table3, force_hbm_gather=True))
    ref3 = emb_table3[x3]
    assert out3.shape == (batch3, seq3, d_model3)
    assert out3.dtype == emb_table3.dtype
    assert jnp.allclose(out3, ref3), "case 3: Pallas HBM gather != reference"

    print("KERNEL_OK")
</pallas_src>

<mosaic_0001>
module attributes {stable_mosaic.version = 11 : i64} {
  func.func @_vmem_gather_kernel(%arg0: i32, %arg1: memref<16xi32, #tpu.memory_space<smem>>, %arg2: memref<256x128xf32, #tpu.memory_space<vmem>>, %arg3: memref<16x128xf32, #tpu.memory_space<vmem>>) attributes {dimension_semantics = [#tpu.dimension_semantics<parallel>], iteration_bounds = array<i64: 1>, scalar_prefetch = 1 : i64, scratch_operands = 0 : i64, tpu.core_type = #tpu.core_type<tc>, window_params = [{pipeline_mode = #tpu.pipeline_mode<synchronous>, transform_indices = @transform_0, window_bounds = array<i64: 256, 128>}, {transform_indices = @transform_1, window_bounds = array<i64: 16, 128>}]} {
    %c16_i32 = arith.constant 16 : i32
    %0 = arith.muli %arg0, %c16_i32 : i32
    %c0_i32 = arith.constant 0 : i32
    %c16_i32_0 = arith.constant 16 : i32
    %1 = arith.addi %c0_i32, %c16_i32_0 : i32
    %c1_i32 = arith.constant 1 : i32
    scf.for %arg4 = %c0_i32 to %1 step %c1_i32  : i32 {
      %2 = arith.addi %0, %arg4 : i32
      %3 = arith.index_cast %2 : i32 to index
      %4 = memref.load %arg1[%3] : memref<16xi32, #tpu.memory_space<smem>>
      %5 = arith.index_cast %4 : i32 to index
      %c0 = arith.constant 0 : index
      %6 = vector.load %arg2[%5, %c0] : memref<256x128xf32, #tpu.memory_space<vmem>>, vector<1x128xf32>
      %7 = arith.index_cast %arg4 : i32 to index
      %c0_2 = arith.constant 0 : index
      %8 = vector.load %arg3[%7, %c0_2] : memref<16x128xf32, #tpu.memory_space<vmem>>, vector<1x128xf32>
      tpu.vector_store %arg3[%7, %c0_2], %6 {strides = array<i32>} : memref<16x128xf32, #tpu.memory_space<vmem>>, vector<1x128xf32>,
    }
    %c16_i32_1 = arith.constant 16 : i32
    return
  }
  func.func @transform_0(%arg0: i32, %arg1: memref<16xi32, #tpu.memory_space<smem>>) -> (i32, i32) {
    %c0_i32 = arith.constant 0 : i32
    %c0_i32_0 = arith.constant 0 : i32
    %c0_i32_1 = arith.constant 0 : i32
    return %c0_i32, %c0_i32_0 : i32, i32
  }
  func.func @transform_1(%arg0: i32, %arg1: memref<16xi32, #tpu.memory_space<smem>>) -> (i32, i32) {
    %c0_i32 = arith.constant 0 : i32
    %c0_i32_0 = arith.constant 0 : i32
    return %arg0, %c0_i32 : i32, i32
  }
}

</mosaic_0001>

<bundles_post_ra>
// kernel: tpu_custom_call.1
= control target key start
LH: loop header
LB: loop body
LE: loop exit
PB: predicated region body
PF: predicated region fallthrough
CT: control target
= control target key end

     0   :  { %s160_s12 = smov [#allocation3]   ;;  %s189_s0 = inlined_call_operand.hbm [shape: s32[16], index: 0, kind: input, shape index: {}]   ;;  %s190_s1 = inlined_call_operand.hbm [shape: f32[256,128], index: 1, kind: input, shape index: {}]   ;;  %s191_s2 = inlined_call_operand.hbm [shape: f32[16,128], index: 2, kind: output, shape index: {}]  }
   0x1   :  { %s8_s11 = sshll.u32 %s189_s0, 4  ;;  %s9_s11 = int_to_ptr.hbm [resolvable:$true] %s8_s11 }
   0x2   :  { %11 = dma.hbm_to_smem %s9_s11, 16, %s160_s12, [#allocation2] }
   0x3   :  { %150 = dma.done.wait [#allocation2], 16 }
   0x4   :  { %151 = vsyncadd [#allocation2], 4294967280 }
   0x5   :  { %14 = sfence }
   0x6   :  { %15 = vsyncpa [#allocation5], 0 }
   0x7   :  { %16 = vsyncpa [#allocation6], 0  ;;  %s21_s15 = sshll.u32 %s190_s1, 4  ;;  %s161_s16 = smov [#allocation4]   ;;  %s22_s15 = int_to_ptr.hbm [resolvable:$true] %s21_s15 }
   0x8   :  { %s23_s17 = sshll.u32 %s161_s16, 4  ;;  %s162_s18 = smov 128   ;;  %s24_s17 = int_to_ptr.vmem [resolvable:$true] %s23_s17 }
   0x9   :  { %s163_s19 = smov 8  }
   0xa   :  { %29 = dma.hbm_to_vmem [thread:$0]  %s22_s15, 4096, %s24_s17, [#allocation5], %s162_s18, %s162_s18, %s163_s19  }
   0xb   :  { %152 = dma.done.wait [#allocation5], 4096  }
   0xc   :  { %153 = vsyncadd [#allocation5], 4294963200  ;;  %s156_s0 = smov 0  }
   0xd LB: > { %s42_s20 = sld [smem:[#allocation3 + %s158_s0]]  ;;  %s45_s22 = scalar_lea.vmem [#allocation7], %s158_s0  ;;  %s158_s0 = sphi %s156_s0, %s40_s0  }
   0xe   : > { %s40_s0 = sadd.s32 1, %s158_s0  }
   0xf   : > { %p37_p0 = scmp.ge.s32.totalorder %s40_s0, 16  }
  0x10   :  { %s53_s24 = sshll.u32 (%p37_p0), %s191_s2, 4  ;;  %s164_s25 = smov (%p37_p0), [#allocation7]   ;;  %s54_s24 = int_to_ptr.hbm [resolvable:$true] %s53_s24 }
  0x11   :  { %39 = sbr.rel (!%p37_p0) target bundleno = 13 (0xd), region = 37  ;;  %s51_s26 = sshll.u32 (%p37_p0), %s164_s25, 4  ;;  %s52_s26 = int_to_ptr.vmem [resolvable:$true] %s51_s26 }
  0x13   : > { %s43_s21 = scalar_lea.vmem [#allocation4], %s42_s20 }
  0x14   : > { %v44_v0 = vld [vmem:[%s43_s21] sm:$0x1] }
  0x15   : > { %46 = vst [vmem:[%s45_s22] sm:$0x1] %v44_v0 }
  0x16   :  { %59 = dma.vmem_to_hbm [thread:$0]  %s52_s26, 256, %s54_s24, [#allocation6], %s162_s18, %s162_s18, %s163_s19  }
  0x17   :  { %154 = dma.done.wait [#allocation6], 256  }
  0x18   :  { %155 = vsyncadd [#allocation6], 4294967040 }
  0x19   :  { %64 = vsyncpa [#allocation5], 1 }
  0x1a   :  { %65 = vsyncpa [#allocation6], 1 }

</bundles_post_ra>
